<compile_context>
chip_gen: v6e
topology: v6e:2x2x1
jax: 0.10.0
libtpu: 0.0.40
codegen_flags: <defaults>
</compile_context>

<pallas_src>
import random

import numpy as np
import jax
import jax.numpy as jnp
from jax.experimental import pallas as pl
from jax.experimental.pallas import tpu as pltpu

_ROW_TILE = 512                   # max rows per grid step
_TMP_BUDGET = 16 * 1024 * 1024    # budget for per-tile (tn, V_pad) temporaries


def _round_up(x: int, m: int) -> int:
    return (x + m - 1) // m * m


def _tokenizer_kernel(z_ref, et_ref, ehi_ref, elo_ref, e2_ref, mw_ref,
                      zq_ref, idx_ref, part_ref):
    z = z_ref[...]                        # (tn, C_pad) f32
    mask = mw_ref[:, 0:1]                 # (tn, 1) validity mask
    smw = mw_ref[:, 1:2]                  # (tn, 1) smoothness pair weight

    # --- F.normalize(z, p=2, dim=-1): one EUP rsqrt per row ---
    ssq = jnp.sum(z * z, axis=-1, keepdims=True)
    z = z * jax.lax.rsqrt(jnp.maximum(ssq, 1e-24))

    # --- distance scores on the MXU (bf16 inputs, f32 accumulate).  Codebook
    # is pre-transposed to (C_pad, V_pad): RHS contraction dim is leading, so
    # no per-tile XLU transpose. ---
    scores = jax.lax.dot_general(
        z.astype(jnp.bfloat16), et_ref[...],
        (((1,), (0,)), ((), ())), preferred_element_type=jnp.float32)  # (tn, V_pad)

    # d = ||e||^2 - 2 z.e  (row-constant ||z||^2 dropped; cannot move argmin)
    d = e2_ref[...] - 2.0 * scores
    v_pad = d.shape[-1]

    # --- argmin with first-index tie-break (matches torch.argmin) ---
    d_min = jnp.min(d, axis=-1, keepdims=True)
    iota_v = jax.lax.broadcasted_iota(jnp.int32, d.shape, 1)
    idx = jnp.min(jnp.where(d == d_min, iota_v, v_pad), axis=-1, keepdims=True)

    # --- quantize: one-hot @ codebook via hi/lo bf16 split (2 bf16 MXU passes
    # instead of one f32 pass; z_q exact to ~2^-18 relative) ---
    onehot = (iota_v == idx).astype(jnp.bfloat16)
    z_q = jax.lax.dot_general(onehot, ehi_ref[...], (((1,), (0,)), ((), ())),
                              preferred_element_type=jnp.float32)
    z_q = z_q + jax.lax.dot_general(onehot, elo_ref[...], (((1,), (0,)), ((), ())),
                                    preferred_element_type=jnp.float32)
    z_q = z_q * mask

    zq_ref[...] = z_q
    idx_ref[...] = idx.astype(jnp.int32)

    # --- per-tile loss partials (final divides + cross-tile boundary pairs are
    # added in the wrapper so the grid axis stays fully parallel) ---
    commit_num = jnp.sum(((z - z_q) ** 2) * mask)
    commit_den = jnp.sum(mask)
    sd = ((z_q[:-1, :] - z_q[1:, :]) ** 2) * smw[:-1, :]
    smooth_num = jnp.sum(sd)
    smooth_den = jnp.sum(smw)

    lane = jax.lax.broadcasted_iota(jnp.int32, (1, 8, 128), 2)
    part_ref[...] = (commit_num * (lane == 0).astype(jnp.float32)
                     + commit_den * (lane == 1).astype(jnp.float32)
                     + smooth_num * (lane == 2).astype(jnp.float32)
                     + smooth_den * (lane == 3).astype(jnp.float32))


def _run_kernel(z_pad, et_bf16, e_hi, e_lo, e2_row, mw_pad, *, tn):
    n_pad, c_pad = z_pad.shape
    v_pad = e_hi.shape[0]
    num_tiles = n_pad // tn

    # Whole-array VMEM residency: loaded once, no per-step double buffering.
    resident = pl.BlockSpec(memory_space=pltpu.MemorySpace.VMEM)
    in_specs = [
        pl.BlockSpec((tn, c_pad), lambda i: (i, 0)),   # z rows (streamed)
        resident,                                      # codebook^T bf16 (C_pad, V_pad)
        resident,                                      # codebook hi bf16 (V_pad, C_pad)
        resident,                                      # codebook lo bf16 (V_pad, C_pad)
        resident,                                      # ||e||^2 row f32 (1, V_pad)
        pl.BlockSpec((tn, 2), lambda i: (i, 0)),       # packed [mask, pair-weight]
    ]
    out_specs = (
        pl.BlockSpec((tn, c_pad), lambda i: (i, 0)),       # z_q (lane-dense)
        pl.BlockSpec((tn, 1), lambda i: (i, 0)),           # indices
        pl.BlockSpec((1, 8, 128), lambda i: (i, 0, 0)),    # loss partials
    )
    out_shape = (
        jax.ShapeDtypeStruct((n_pad, c_pad), jnp.float32),
        jax.ShapeDtypeStruct((n_pad, 1), jnp.int32),
        jax.ShapeDtypeStruct((num_tiles, 8, 128), jnp.float32),
    )
    cost = pl.CostEstimate(
        flops=int(6 * n_pad * v_pad * c_pad),
        transcendentals=int(n_pad),
        bytes_accessed=int(4 * (2 * n_pad * c_pad + 3 * n_pad + v_pad)
                           + 2 * 3 * v_pad * c_pad),
    )
    return pl.pallas_call(
        _tokenizer_kernel,
        out_shape=out_shape,
        grid=(num_tiles,),
        in_specs=in_specs,
        out_specs=out_specs,
        compiler_params=pltpu.CompilerParams(
            dimension_semantics=("parallel",),
            vmem_limit_bytes=64 * 1024 * 1024),
        cost_estimate=cost,
    )(z_pad, et_bf16, e_hi, e_lo, e2_row, mw_pad)


@jax.jit
def _tokenizer_device(z, codebook_weight, mask):
    """Device-side part of Tokenizer.forward (everything except the ragged,
    RNG-driven host post-processing)."""
    B, T, C = z.shape
    V = codebook_weight.shape[0] - 1
    N = B * T

    c_pad = _round_up(C, 128)
    v_pad = _round_up(V, 128)

    # Row tile: as big as possible (amortizes grid-step overhead and codebook
    # reuse) while bounding the (tn, V_pad) score/one-hot temporaries.
    # TODO(synk): for very large codebooks (V_pad >> 8K) a V-chunked running
    # argmin inside the kernel would allow larger row tiles than this cap.
    row_bytes = 16 * v_pad + 24 * c_pad
    tn = min(_ROW_TILE, max(8, (_TMP_BUDGET // row_bytes) // 8 * 8))
    tn = max(8, min(tn, _round_up(N, 8)))
    n_pad = _round_up(N, tn)
    num_tiles = n_pad // tn

    # --- activations (skip the pad copy when already aligned) ---
    z_flat = z.reshape(N, C).astype(jnp.float32)
    if (n_pad, c_pad) == (N, C):
        z_pad = z_flat
    else:
        z_pad = jnp.zeros((n_pad, c_pad), jnp.float32).at[:N, :C].set(z_flat)

    # Packed per-row scalars: lane 0 = validity mask, lane 1 = smoothness pair
    # weight of (t, t+1) = mask[b, t+1] (0 at the last step of each sequence,
    # so cross-batch pairs in the flattened view are excluded automatically).
    mask_f = mask.reshape(B, T).astype(jnp.float32)
    smw = jnp.concatenate([mask_f[:, 1:], jnp.zeros((B, 1), jnp.float32)], axis=1)
    mw = jnp.stack([mask_f.reshape(N), smw.reshape(N)], axis=-1)      # (N, 2)
    if n_pad != N:
        mw = jnp.zeros((n_pad, 2), jnp.float32).at[:N].set(mw)

    # --- codebook prep (row 0 reserved and dropped, like the reference) ---
    # TODO(synk): if the codebook is static across calls, hoist this prep
    # (transposed / hi / lo copies, ||e||^2) out of the per-call path.
    e = codebook_weight[1:, :].astype(jnp.float32)
    if (v_pad, c_pad) == (V, C):
        e_pad = e
    else:
        e_pad = jnp.zeros((v_pad, c_pad), jnp.float32).at[:V, :C].set(e)
    e_hi = e_pad.astype(jnp.bfloat16)                                  # (V_pad, C_pad)
    e_lo = (e_pad - e_hi.astype(jnp.float32)).astype(jnp.bfloat16)     # residual
    et_bf16 = e_hi.T                                                   # (C_pad, V_pad)
    e2 = jnp.sum(e_pad * e_pad, axis=-1)
    e2 = jnp.where(jnp.arange(v_pad) < V, e2, 1e30).reshape(1, v_pad)  # pads never win

    z_q_pad, idx_pad, partials = _run_kernel(
        z_pad, et_bf16, e_hi, e_lo, e2, mw, tn=tn)

    parts = partials[:, 0, :]                        # (num_tiles, 128)
    commit_num = jnp.sum(parts[:, 0])
    commit_den = jnp.sum(parts[:, 1])
    smooth_num = jnp.sum(parts[:, 2])
    smooth_den = jnp.sum(parts[:, 3])

    # Cross-tile (t, t+1) boundary pairs, one per tile boundary: exact parity
    # with the untiled computation while keeping the grid axis parallel.
    if num_tiles > 1:
        b = jnp.arange(1, num_tiles) * tn
        prev = z_q_pad[b - 1]
        nxt = z_q_pad[b]
        w = mw[b - 1, 1][:, None]
        smooth_num = smooth_num + jnp.sum(((prev - nxt) ** 2) * w)

    commitment_loss = commit_num / commit_den
    smoothness_loss = smooth_num / smooth_den

    z_q = z_q_pad[:N, :C].reshape(B, T, C)
    encodings = idx_pad[:N, 0].reshape(B, T)
    return smoothness_loss, commitment_loss, z_q, encodings


def _remove_consecutive_repeated_indices(min_encoding_indices, mask, z_q, rng):
    """Host-side replica of Tokenizer.remove_consecutive_repeated_indices.

    Python RNG + data-dependent (ragged) shapes, so it cannot be a Pallas
    kernel; plain numpy glue on the kernel outputs.
    """
    B, T = min_encoding_indices.shape
    selected_indices_list = []
    selected_encodings_list = []
    max_len = 0
    for b in range(B):
        indices = min_encoding_indices[b]
        sel_idx, sel_enc = [], []
        start = 0
        for i in range(1, T):
            if mask[b, i] == 0:
                break
            if indices[i] != indices[i - 1]:
                ii = rng.randint(start, i - 1)
                sel_idx.append(ii)
                sel_enc.append(int(indices[ii]) + 1)
                start = i
        ii = rng.randint(start, T - 1)
        sel_idx.append(ii)
        sel_enc.append(int(indices[ii]) + 1)
        selected_encodings_list.append(sel_enc)
        selected_indices_list.append(sel_idx)
        max_len = max(max_len, len(sel_idx))

    padded = np.zeros((B, max_len), dtype=np.int64)
    masks = np.zeros((B, max_len), dtype=np.float32)
    for b, idxs in enumerate(selected_indices_list):
        L = len(idxs)
        padded[b, :L] = idxs
        masks[b, :L] = 1.0
    masks = masks[..., None]                          # (B, L, 1)
    gather_idx = np.repeat(padded[..., None], z_q.shape[-1], axis=-1)
    n_z_q = np.take_along_axis(z_q, gather_idx, axis=1) * masks
    return n_z_q, masks, selected_encodings_list


def tokenizer_forward(z, codebook_weight, mask, seed=0):
    """Equivalent of Tokenizer.forward(z, codebook, mask).

    z:               (B, T, C) float32
    codebook_weight: (vocab_size, C) float32  (row 0 reserved, dropped)
    mask:            (B, T, 1) float32
    Returns (smoothness_loss, commitment_loss, z_q, n_z_q, n_mask,
             selected_encodings_list).
    """
    smooth, commit, z_q, encodings = _tokenizer_device(z, codebook_weight, mask)

    # TODO(synk): codebook_usage() only produces a matplotlib plot (pure side
    # effect); intentionally not implemented.

    rng = random.Random(seed)
    n_z_q, n_mask, selected_encodings_list = _remove_consecutive_repeated_indices(
        np.asarray(encodings), np.asarray(jnp.squeeze(mask, -1)),
        np.asarray(z_q), rng)

    return (smooth, commit, z_q,
            jnp.asarray(n_z_q), jnp.asarray(n_mask), selected_encodings_list)


if __name__ == "__main__":
    key = jax.random.PRNGKey(0)
    B, T, C, VOCAB = 2, 8, 32, 12
    k1, k2 = jax.random.split(key)

    z = jax.random.normal(k1, (B, T, C), dtype=jnp.float32)
    codebook_weight = jax.random.normal(k2, (VOCAB, C), dtype=jnp.float32)
    lengths = jnp.array([8, 5])
    mask = (jnp.arange(T)[None, :] < lengths[:, None]).astype(jnp.float32)[..., None]

    smooth, commit, z_q, n_z_q, n_mask, sel_enc = tokenizer_forward(
        z, codebook_weight, mask)
    jax.block_until_ready((smooth, commit, z_q, n_z_q, n_mask))
    print("KERNEL_OK")
</pallas_src>

<mosaic_0001>
module attributes {stable_mosaic.version = 11 : i64} {
  func.func @_tokenizer_kernel(%arg0: i32, %arg1: memref<16x128xf32, #tpu.memory_space<vmem>>, %arg2: memref<128x128xbf16, #tpu.memory_space<vmem>>, %arg3: memref<128x128xbf16, #tpu.memory_space<vmem>>, %arg4: memref<128x128xbf16, #tpu.memory_space<vmem>>, %arg5: memref<1x128xf32, #tpu.memory_space<vmem>>, %arg6: memref<16x2xf32, #tpu.memory_space<vmem>>, %arg7: memref<16x128xf32, #tpu.memory_space<vmem>>, %arg8: memref<16x1xi32, #tpu.memory_space<vmem>>, %arg9: memref<1x8x128xf32, #tpu.memory_space<vmem>>) attributes {dimension_semantics = [#tpu.dimension_semantics<parallel>], iteration_bounds = array<i64: 1>, scalar_prefetch = 0 : i64, scratch_operands = 0 : i64, tpu.core_type = #tpu.core_type<tc>, window_params = [{transform_indices = @transform_0, window_bounds = array<i64: 16, 128>}, {pipeline_mode = #tpu.pipeline_mode<synchronous>, transform_indices = @transform_1, window_bounds = array<i64: 128, 128>}, {pipeline_mode = #tpu.pipeline_mode<synchronous>, transform_indices = @transform_2, window_bounds = array<i64: 128, 128>}, {pipeline_mode = #tpu.pipeline_mode<synchronous>, transform_indices = @transform_3, window_bounds = array<i64: 128, 128>}, {pipeline_mode = #tpu.pipeline_mode<synchronous>, transform_indices = @transform_4, window_bounds = array<i64: 1, 128>}, {transform_indices = @transform_5, window_bounds = array<i64: 16, 2>}, {transform_indices = @transform_6, window_bounds = array<i64: 16, 128>}, {transform_indices = @transform_7, window_bounds = array<i64: 16, 1>}, {transform_indices = @transform_8, window_bounds = array<i64: 1, 8, 128>}]} {
    %c0 = arith.constant 0 : index
    %c0_0 = arith.constant 0 : index
    %0 = vector.load %arg1[%c0, %c0_0] : memref<16x128xf32, #tpu.memory_space<vmem>>, vector<16x128xf32>
    %c0_1 = arith.constant 0 : index
    %c0_2 = arith.constant 0 : index
    %1 = vector.load %arg6[%c0_1, %c0_2] : memref<16x2xf32, #tpu.memory_space<vmem>>, vector<16x1xf32>
    %c0_3 = arith.constant 0 : index
    %c1 = arith.constant 1 : index
    %2 = vector.load %arg6[%c0_3, %c1] : memref<16x2xf32, #tpu.memory_space<vmem>>, vector<16x1xf32>
    %3 = arith.mulf %0, %0 : vector<16x128xf32>
    %cst = arith.constant dense<0.000000e+00> : vector<16xf32>
    %4 = vector.multi_reduction <add>, %3, %cst [1] : vector<16x128xf32> to vector<16xf32>
    %5 = vector.shape_cast %4 : vector<16xf32> to vector<16x1xf32>
    %cst_4 = arith.constant 1.000000e-24 : f32
    %6 = vector.broadcast %cst_4 : f32 to vector<16x1xf32>
    %7 = arith.maximumf %5, %6 : vector<16x1xf32>
    %8 = math.rsqrt %7 : vector<16x1xf32>
    %9 = vector.broadcast %8 : vector<16x1xf32> to vector<16x128xf32>
    %10 = arith.mulf %0, %9 : vector<16x128xf32>
    %11 = arith.truncf %10 : vector<16x128xf32> to vector<16x128xbf16>
    %c0_5 = arith.constant 0 : index
    %c0_6 = arith.constant 0 : index
    %12 = vector.load %arg2[%c0_5, %c0_6] : memref<128x128xbf16, #tpu.memory_space<vmem>>, vector<128x128xbf16>
    %cst_7 = arith.constant dense<0.000000e+00> : vector<16x128xf32>
    %13 = tpu.matmul %11, %12, %cst_7 {dimension_numbers = #tpu.dot_dimension_numbers<[1], [0], [0], [1], [0, 0, 1, 1], [], []>} : vector<16x128xbf16>, vector<128x128xbf16>, vector<16x128xf32> -> vector<16x128xf32>
    %c0_8 = arith.constant 0 : index
    %c0_9 = arith.constant 0 : index
    %14 = vector.load %arg5[%c0_8, %c0_9] : memref<1x128xf32, #tpu.memory_space<vmem>>, vector<1x128xf32>
    %cst_10 = arith.constant 2.000000e+00 : f32
    %15 = vector.broadcast %cst_10 : f32 to vector<16x128xf32>
    %16 = arith.mulf %15, %13 : vector<16x128xf32>
    %17 = vector.broadcast %14 : vector<1x128xf32> to vector<16x128xf32>
    %18 = arith.subf %17, %16 : vector<16x128xf32>
    %cst_11 = arith.constant dense<0x7F800000> : vector<16xf32>
    %19 = vector.multi_reduction <minimumf>, %18, %cst_11 [1] : vector<16x128xf32> to vector<16xf32>
    %20 = vector.shape_cast %19 : vector<16xf32> to vector<16x1xf32>
    %21 = tpu.iota {dimensions = array<i32: 1>} : vector<16x128xi32>
    %22 = vector.broadcast %20 : vector<16x1xf32> to vector<16x128xf32>
    %23 = arith.cmpf oeq, %18, %22 : vector<16x128xf32>
    %c128_i32 = arith.constant 128 : i32
    %24 = vector.broadcast %c128_i32 : i32 to vector<16x128xi32>
    %25 = arith.select %23, %21, %24 : vector<16x128xi1>, vector<16x128xi32>
    %cst_12 = arith.constant dense<2147483647> : vector<16xi32>
    %26 = vector.multi_reduction <minsi>, %25, %cst_12 [1] : vector<16x128xi32> to vector<16xi32>
    %27 = vector.shape_cast %26 : vector<16xi32> to vector<16x1xi32>
    %28 = vector.broadcast %27 : vector<16x1xi32> to vector<16x128xi32>
    %29 = arith.cmpi eq, %21, %28 : vector<16x128xi32>
    %30 = arith.extui %29 : vector<16x128xi1> to vector<16x128xi32>
    %31 = arith.sitofp %30 : vector<16x128xi32> to vector<16x128xf32>
    %32 = arith.truncf %31 : vector<16x128xf32> to vector<16x128xbf16>
    %c0_13 = arith.constant 0 : index
    %c0_14 = arith.constant 0 : index
    %33 = vector.load %arg3[%c0_13, %c0_14] : memref<128x128xbf16, #tpu.memory_space<vmem>>, vector<128x128xbf16>
    %cst_15 = arith.constant dense<0.000000e+00> : vector<16x128xf32>
    %34 = tpu.matmul %32, %33, %cst_15 {dimension_numbers = #tpu.dot_dimension_numbers<[1], [0], [0], [1], [0, 0, 1, 1], [], []>} : vector<16x128xbf16>, vector<128x128xbf16>, vector<16x128xf32> -> vector<16x128xf32>
    %c0_16 = arith.constant 0 : index
    %c0_17 = arith.constant 0 : index
    %35 = vector.load %arg4[%c0_16, %c0_17] : memref<128x128xbf16, #tpu.memory_space<vmem>>, vector<128x128xbf16>
    %cst_18 = arith.constant dense<0.000000e+00> : vector<16x128xf32>
    %36 = tpu.matmul %32, %35, %cst_18 {dimension_numbers = #tpu.dot_dimension_numbers<[1], [0], [0], [1], [0, 0, 1, 1], [], []>} : vector<16x128xbf16>, vector<128x128xbf16>, vector<16x128xf32> -> vector<16x128xf32>
    %37 = arith.addf %34, %36 : vector<16x128xf32>
    %38 = vector.broadcast %1 : vector<16x1xf32> to vector<16x128xf32>
    %39 = arith.mulf %37, %38 : vector<16x128xf32>
    %c0_19 = arith.constant 0 : index
    %c0_20 = arith.constant 0 : index
    %40 = vector.load %arg7[%c0_19, %c0_20] : memref<16x128xf32, #tpu.memory_space<vmem>>, vector<16x128xf32>
    tpu.vector_store %arg7[%c0_19, %c0_20], %39 {strides = array<i32>} : memref<16x128xf32, #tpu.memory_space<vmem>>, vector<16x128xf32>,
    %c0_21 = arith.constant 0 : index
    %c0_22 = arith.constant 0 : index
    %41 = vector.load %arg8[%c0_21, %c0_22] : memref<16x1xi32, #tpu.memory_space<vmem>>, vector<16x1xi32>
    tpu.vector_store %arg8[%c0_21, %c0_22], %27 {strides = array<i32>} : memref<16x1xi32, #tpu.memory_space<vmem>>, vector<16x1xi32>,
    %42 = arith.subf %10, %39 : vector<16x128xf32>
    %43 = arith.mulf %42, %42 : vector<16x128xf32>
    %44 = vector.broadcast %1 : vector<16x1xf32> to vector<16x128xf32>
    %45 = arith.mulf %43, %44 : vector<16x128xf32>
    %46 = vector.shape_cast %45 : vector<16x128xf32> to vector<1x16x128xf32>
    %cst_23 = arith.constant dense<0.000000e+00> : vector<1xf32>
    %47 = vector.multi_reduction <add>, %46, %cst_23 [1, 2] : vector<1x16x128xf32> to vector<1xf32>
    %48 = vector.shape_cast %47 : vector<1xf32> to vector<1x1x1xf32>
    %49 = vector.extract %48[0, 0, 0] : f32 from vector<1x1x1xf32>
    %50 = vector.shape_cast %1 : vector<16x1xf32> to vector<1x16x1xf32>
    %cst_24 = arith.constant dense<0.000000e+00> : vector<1xf32>
    %51 = vector.multi_reduction <add>, %50, %cst_24 [1, 2] : vector<1x16x1xf32> to vector<1xf32>
    %52 = vector.shape_cast %51 : vector<1xf32> to vector<1x1x1xf32>
    %53 = vector.extract %52[0, 0, 0] : f32 from vector<1x1x1xf32>
    %54 = vector.extract_strided_slice %39 {offsets = [0, 0], sizes = [15, 128], strides = [1, 1]} : vector<16x128xf32> to vector<15x128xf32>
    %55 = vector.extract_strided_slice %39 {offsets = [1, 0], sizes = [15, 128], strides = [1, 1]} : vector<16x128xf32> to vector<15x128xf32>
    %56 = arith.subf %54, %55 : vector<15x128xf32>
    %57 = arith.mulf %56, %56 : vector<15x128xf32>
    %58 = vector.extract_strided_slice %2 {offsets = [0, 0], sizes = [15, 1], strides = [1, 1]} : vector<16x1xf32> to vector<15x1xf32>
    %59 = vector.broadcast %58 : vector<15x1xf32> to vector<15x128xf32>
    %60 = arith.mulf %57, %59 : vector<15x128xf32>
    %61 = vector.shape_cast %60 : vector<15x128xf32> to vector<1x15x128xf32>
    %cst_25 = arith.constant dense<0.000000e+00> : vector<1xf32>
    %62 = vector.multi_reduction <add>, %61, %cst_25 [1, 2] : vector<1x15x128xf32> to vector<1xf32>
    %63 = vector.shape_cast %62 : vector<1xf32> to vector<1x1x1xf32>
    %64 = vector.extract %63[0, 0, 0] : f32 from vector<1x1x1xf32>
    %65 = vector.shape_cast %2 : vector<16x1xf32> to vector<1x16x1xf32>
    %cst_26 = arith.constant dense<0.000000e+00> : vector<1xf32>
    %66 = vector.multi_reduction <add>, %65, %cst_26 [1, 2] : vector<1x16x1xf32> to vector<1xf32>
    %67 = vector.shape_cast %66 : vector<1xf32> to vector<1x1x1xf32>
    %68 = vector.extract %67[0, 0, 0] : f32 from vector<1x1x1xf32>
    %69 = tpu.iota {dimensions = array<i32: 2>} : vector<1x8x128xi32>
    %c0_i32 = arith.constant 0 : i32
    %70 = vector.broadcast %c0_i32 : i32 to vector<1x8x128xi32>
    %71 = arith.cmpi eq, %69, %70 : vector<1x8x128xi32>
    %72 = arith.extui %71 : vector<1x8x128xi1> to vector<1x8x128xi32>
    %73 = arith.sitofp %72 : vector<1x8x128xi32> to vector<1x8x128xf32>
    %74 = vector.broadcast %49 : f32 to vector<1x8x128xf32>
    %75 = arith.mulf %74, %73 : vector<1x8x128xf32>
    %c1_i32 = arith.constant 1 : i32
    %76 = vector.broadcast %c1_i32 : i32 to vector<1x8x128xi32>
    %77 = arith.cmpi eq, %69, %76 : vector<1x8x128xi32>
    %78 = arith.extui %77 : vector<1x8x128xi1> to vector<1x8x128xi32>
    %79 = arith.sitofp %78 : vector<1x8x128xi32> to vector<1x8x128xf32>
    %80 = vector.broadcast %53 : f32 to vector<1x8x128xf32>
    %81 = arith.mulf %80, %79 : vector<1x8x128xf32>
    %82 = arith.addf %75, %81 : vector<1x8x128xf32>
    %c2_i32 = arith.constant 2 : i32
    %83 = vector.broadcast %c2_i32 : i32 to vector<1x8x128xi32>
    %84 = arith.cmpi eq, %69, %83 : vector<1x8x128xi32>
    %85 = arith.extui %84 : vector<1x8x128xi1> to vector<1x8x128xi32>
    %86 = arith.sitofp %85 : vector<1x8x128xi32> to vector<1x8x128xf32>
    %87 = vector.broadcast %64 : f32 to vector<1x8x128xf32>
    %88 = arith.mulf %87, %86 : vector<1x8x128xf32>
    %89 = arith.addf %82, %88 : vector<1x8x128xf32>
    %c3_i32 = arith.constant 3 : i32
    %90 = vector.broadcast %c3_i32 : i32 to vector<1x8x128xi32>
    %91 = arith.cmpi eq, %69, %90 : vector<1x8x128xi32>
    %92 = arith.extui %91 : vector<1x8x128xi1> to vector<1x8x128xi32>
    %93 = arith.sitofp %92 : vector<1x8x128xi32> to vector<1x8x128xf32>
    %94 = vector.broadcast %68 : f32 to vector<1x8x128xf32>
    %95 = arith.mulf %94, %93 : vector<1x8x128xf32>
    %96 = arith.addf %89, %95 : vector<1x8x128xf32>
    %c0_27 = arith.constant 0 : index
    %c0_28 = arith.constant 0 : index
    %c0_29 = arith.constant 0 : index
    %97 = vector.load %arg9[%c0_27, %c0_28, %c0_29] : memref<1x8x128xf32, #tpu.memory_space<vmem>>, vector<1x8x128xf32>
    tpu.vector_store %arg9[%c0_27, %c0_28, %c0_29], %96 {strides = array<i32>} : memref<1x8x128xf32, #tpu.memory_space<vmem>>, vector<1x8x128xf32>,
    return
  }
  func.func @transform_0(%arg0: i32) -> (i32, i32) {
    %c0_i32 = arith.constant 0 : i32
    %c0_i32_0 = arith.constant 0 : i32
    return %arg0, %c0_i32 : i32, i32
  }
  func.func @transform_1(%arg0: i32) -> (i32, i32) {
    %c0_i32 = arith.constant 0 : i32
    %c0_i32_0 = arith.constant 0 : i32
    %c0_i32_1 = arith.constant 0 : i32
    return %c0_i32, %c0_i32_0 : i32, i32
  }
  func.func @transform_2(%arg0: i32) -> (i32, i32) {
    %c0_i32 = arith.constant 0 : i32
    %c0_i32_0 = arith.constant 0 : i32
    %c0_i32_1 = arith.constant 0 : i32
    return %c0_i32, %c0_i32_0 : i32, i32
  }
  func.func @transform_3(%arg0: i32) -> (i32, i32) {
    %c0_i32 = arith.constant 0 : i32
    %c0_i32_0 = arith.constant 0 : i32
    %c0_i32_1 = arith.constant 0 : i32
    return %c0_i32, %c0_i32_0 : i32, i32
  }
  func.func @transform_4(%arg0: i32) -> (i32, i32) {
    %c0_i32 = arith.constant 0 : i32
    %c0_i32_0 = arith.constant 0 : i32
    %c0_i32_1 = arith.constant 0 : i32
    return %c0_i32, %c0_i32_0 : i32, i32
  }
  func.func @transform_5(%arg0: i32) -> (i32, i32) {
    %c0_i32 = arith.constant 0 : i32
    %c0_i32_0 = arith.constant 0 : i32
    return %arg0, %c0_i32 : i32, i32
  }
  func.func @transform_6(%arg0: i32) -> (i32, i32) {
    %c0_i32 = arith.constant 0 : i32
    %c0_i32_0 = arith.constant 0 : i32
    return %arg0, %c0_i32 : i32, i32
  }
  func.func @transform_7(%arg0: i32) -> (i32, i32) {
    %c0_i32 = arith.constant 0 : i32
    %c0_i32_0 = arith.constant 0 : i32
    return %arg0, %c0_i32 : i32, i32
  }
  func.func @transform_8(%arg0: i32) -> (i32, i32, i32) {
    %c0_i32 = arith.constant 0 : i32
    %c0_i32_0 = arith.constant 0 : i32
    %c0_i32_1 = arith.constant 0 : i32
    return %arg0, %c0_i32, %c0_i32_0 : i32, i32, i32
  }
}

</mosaic_0001>

<bundles_post_ra>
// kernel: squeeze.11
= control target key start
LH: loop header
LB: loop body
LE: loop exit
PB: predicated region body
PF: predicated region fallthrough
CT: control target
= control target key end

     0   :  { %s77_s0 = inlined_call_operand.vmem [shape: s32[16], index: 0, kind: input, shape index: {}]   ;;  %s78_s1 = inlined_call_operand.hbm [shape: s32[2,8], index: 1, kind: output, shape index: {}]  }
   0x1   :  { %v6_v0 = vld [vmem:[%s77_s0] sm:$0x1] }
   0x2   :  { %2 = vsyncpa [#allocation1], 0  ;;  %7 = vst [vmem:[#allocation3] sm:$0x1] %v6_v0  ;;  %vm9_vm0 = vcmask 64512   ;;  %s59_s0 = smov 120  }
   0x3   :  { %s60_s8 = smov [#allocation0]  }
   0x4   :  { %s29_s9 = sshll.u32 %s60_s8, 4  ;;  %s30_s9 = int_to_ptr.vmem [resolvable:$true] %s29_s9 }
   0x5   :  { %s37_s10 = scalar_lea.vmem %s30_s9, 32  ;;  %p42_p1 = scmp.lt.s32.totalorder %s30_s9, %s30_s9 }
   0x6   :  { %p38_p0 = scmp.ne.s32.totalorder %s30_s9, %s37_s10  ;;  %p43_p2 = scmp.lt.s32.totalorder %s37_s10, %s37_s10 }
   0x8   :  { %p44_p3 = por %p43_p2, %p42_p1 }
   0x9   :  { %v11_v1 = vld [vmem:[#allocation3] sm:$0x1]  }
   0xa   :  { %v8_v2 = vld [vmem:[#allocation3] sm:$0x1]   ;;  %12 = vrot.lane.b32.xlu0 %v11_v1, %s59_s0  ;;  %p45_p4 = pnand %p44_p3, %p38_p0 }
   0xb   :  { %10 = vst.msk [vmem:[#allocation2] sm:$0x1] %vm9_vm0, %v8_v2  }
  0x7c   :  { %v13_v3 = vpop.permute.xlu0 %12  }
  0x7d   :  { %16 = vst.msk [vmem:[#allocation2 + $0x1] sm:$0x1] %vm9_vm0, %v13_v3  }
  0x84   :  { %v21_v4 = vld [vmem:[#allocation2] sm:$0x3] }
  0x85   :  { %24 = vst [vmem:[#allocation0] sm:$0x3] %v21_v4 }
  0x86   :  { %48 = shalt.err (!%p45_p4)
}
  0x87   :  { %32 = dma.vmem_to_hbm [thread:$0]  %s30_s9, 32, %s78_s1, [#allocation1]  }
  0x88   :  { %57 = dma.done.wait [#allocation1], 32  }
  0x89   :  { %58 = vsyncadd [#allocation1], 4294967264 }
  0x8a   :  { %34 = vsyncpa [#allocation1], 1 }

// kernel: _tokenizer_device.1
= control target key start
LH: loop header
LB: loop body
LE: loop exit
PB: predicated region body
PF: predicated region fallthrough
CT: control target
= control target key end

     0   :  { %v715_v2 = vmov 0.0   ;;  %vm716_vm0 = vmmov 0   ;;  %v164_v31 = vlaneseq  ;;  %vm429_vm5 = vcmask 7168   ;;  %s928_s0 = inlined_call_operand.vmem [shape: f32[16,128], index: 0, kind: input, shape index: {}]   ;;  %s929_s1 = inlined_call_operand.vmem [shape: bf16[128,128], index: 1, kind: input, shape index: {}]   ;;  %s930_s4 = inlined_call_operand.vmem [shape: f32[1,128], index: 4, kind: input, shape index: {}]   ;;  %s931_s3 = inlined_call_operand.vmem [shape: bf16[128,128], index: 3, kind: input, shape index: {}]   ;;  %s932_s2 = inlined_call_operand.vmem [shape: bf16[128,128], index: 2, kind: input, shape index: {}]   ;;  %s933_s5 = inlined_call_operand.vmem [shape: f32[16,2], index: 5, kind: input, shape index: {}]   ;;  %s934_s7 = inlined_call_operand.vmem [shape: s32[16,1], index: 7, kind: output, shape index: {1}]   ;;  %s935_s6 = inlined_call_operand.vmem [shape: f32[16,128], index: 6, kind: output, shape index: {0}]   ;;  %s936_s8 = inlined_call_operand.vmem [shape: f32[1,8,128], index: 8, kind: output, shape index: {2}]  }
   0x1   :  { %v27_v0 = vld [vmem:[%s928_s0] sm:$0xff]  ;;  %v28_v1 = vld [vmem:[%s928_s0 + $0x8] sm:$0xff]  ;;  %609 = vmatprep.subr.bf16.mxu0 %v715_v2  ;;  %629 = vmatprep.subr.bf16.mxu1 %v715_v2  ;;  %v687_v4 = vld [vmem:[%s929_s1 + $0x38] sm:$0xff]   ;;  %vm462_vm9 = vcmask 1046528  }
   0x2   :  { %v31_v3 = vmul.f32 %v27_v0, %v27_v0  ;;  %v688_v5 = vld [vmem:[%s929_s1 + $0x30] sm:$0xff]   ;;  %v32_v6 = vmul.f32 %v28_v1, %v28_v1  ;;  %610 = vmatpush3.bf16.msra.mxu0 %v687_v4  ;;  %v689_v7 = vld [vmem:[%s929_s1 + $0x28] sm:$0xff]   ;;  %v690_v8 = vld [vmem:[%s929_s1 + $0x20] sm:$0xff]   ;;  %625 = vmatprep.mubr.msk.bf16.mxu0 %vm716_vm0, %v715_v2  ;;  %v821_v32 = vand.u32 127, %v164_v31 }
   0x3   :  { %611 = vmatprep.subr.bf16.mxu0 %v715_v2  ;;  %v691_v9 = vld [vmem:[%s929_s1 + $0x18] sm:$0xff]   ;;  %645 = vmatprep.mubr.msk.bf16.mxu1 %vm716_vm0, %v715_v2  ;;  %v692_v10 = vld [vmem:[%s929_s1 + $0x10] sm:$0xff]   ;;  %v693_v11 = vld [vmem:[%s929_s1 + $0x8] sm:$0xff]  }
   0x4   :  { %33 = vadd.xlane.f32.xlu0 %v31_v3  ;;  %v694_v12 = vld [vmem:[%s929_s1] sm:$0xff]   ;;  %v695_v41 = vld [vmem:[%s931_s3 + $0x38] sm:$0xff]   ;;  %v697_v43 = vld [vmem:[%s931_s3 + $0x30] sm:$0xff]   ;;  %vm511_vm10 = vcmp.eq.s32.totalorder %v821_v32, 0  ;;  %vm516_vm11 = vcmp.eq.s32.totalorder %v821_v32, 1  ;;  %vm522_vm12 = vcmp.eq.s32.totalorder %v821_v32, 2 }
   0x5   :  { %v555_v23 = vld [vmem:[%s930_s4] ss:$0 sm:$0xff]  ;;  %v696_v42 = vld [vmem:[%s932_s2 + $0x38] sm:$0xff]   ;;  %630 = vmatpush3.bf16.msra.mxu1 %v695_v41  ;;  %v698_v44 = vld [vmem:[%s932_s2 + $0x30] sm:$0xff]   ;;  %vm528_vm13 = vcmp.eq.s32.totalorder %v821_v32, 3 }
   0x6   :  { %612 = vmatpush3.bf16.msra.mxu0 %v688_v5  ;;  %631 = vmatprep.subr.bf16.mxu1 %v715_v2  ;;  %v699_v45 = vld [vmem:[%s931_s3 + $0x28] sm:$0xff]   ;;  %v701_v47 = vld [vmem:[%s931_s3 + $0x20] sm:$0xff]   ;;  %v703_v49 = vld [vmem:[%s931_s3 + $0x18] sm:$0xff]   ;;  %v718_v5 = vmov 1  }
   0x7   :  { %613 = vmatprep.subr.bf16.mxu0 %v715_v2  ;;  %v700_v46 = vld [vmem:[%s932_s2 + $0x28] sm:$0xff]   ;;  %v702_v48 = vld [vmem:[%s932_s2 + $0x20] sm:$0xff]   ;;  %v704_v50 = vld [vmem:[%s932_s2 + $0x18] sm:$0xff]  }
   0x8   :  { %35 = vadd.xlane.f32.xlu0 %v32_v6  ;;  %v705_v51 = vld [vmem:[%s931_s3 + $0x10] sm:$0xff]   ;;  %v707_v61 = vld [vmem:[%s931_s3 + $0x8] sm:$0xff]   ;;  %v709_v63 = vld [vmem:[%s931_s3] sm:$0xff]  }
   0x9   :  { %632 = vmatpush3.bf16.msra.mxu1 %v697_v43  ;;  %v706_v52 = vld [vmem:[%s932_s2 + $0x10] sm:$0xff]   ;;  %v708_v62 = vld [vmem:[%s932_s2 + $0x8] sm:$0xff]   ;;  %v29_v4 = vld [vmem:[%s933_s5] sm:$0xff] }
   0xa   :  { %614 = vmatpush3.bf16.msra.mxu0 %v689_v7  ;;  %633 = vmatprep.subr.bf16.mxu1 %v715_v2  ;;  %v30_v3 = vld [vmem:[%s933_s5 + $0x8] sm:$0xff] }
   0xb   :  { %615 = vmatprep.subr.bf16.mxu0 %v715_v2 }
   0xd   :  { %634 = vmatpush3.bf16.msra.mxu1 %v699_v45 }
   0xe   :  { %616 = vmatpush3.bf16.msra.mxu0 %v690_v8  ;;  %635 = vmatprep.subr.bf16.mxu1 %v715_v2 }
   0xf   :  { %617 = vmatprep.subr.bf16.mxu0 %v715_v2 }
  0x11   :  { %636 = vmatpush3.bf16.msra.mxu1 %v701_v47 }
  0x12   :  { %618 = vmatpush3.bf16.msra.mxu0 %v691_v9  ;;  %637 = vmatprep.subr.bf16.mxu1 %v715_v2 }
  0x13   :  { %619 = vmatprep.subr.bf16.mxu0 %v715_v2 }
  0x15   :  { %638 = vmatpush3.bf16.msra.mxu1 %v703_v49 }
  0x16   :  { %620 = vmatpush3.bf16.msra.mxu0 %v692_v10  ;;  %639 = vmatprep.subr.bf16.mxu1 %v715_v2 }
  0x17   :  { %621 = vmatprep.subr.bf16.mxu0 %v715_v2 }
  0x19   :  { %640 = vmatpush3.bf16.msra.mxu1 %v705_v51 }
  0x1a   :  { %622 = vmatpush3.bf16.msra.mxu0 %v693_v11  ;;  %641 = vmatprep.subr.bf16.mxu1 %v715_v2 }
  0x1b   :  { %623 = vmatprep.subr.bf16.mxu0 %v715_v2 }
  0x1d   :  { %642 = vmatpush3.bf16.msra.mxu1 %v707_v61 }
  0x1e   :  { %624 = vmatpush3.bf16.msra.mxu0 %v694_v12  ;;  %643 = vmatprep.subr.bf16.mxu1 %v715_v2 }
  0x1f   :  { %649 = vmatprep.subr.bf16.mxu0 %v715_v2 }
  0x21   :  { %644 = vmatpush3.bf16.msra.mxu1 %v709_v63 }
  0x8d   :  { %v34_v13 = vpop.xlane.xlu0 %33 }
  0x8e   :  { %v37_v14 = vmax.f32 %v34_v13, 1e-24 }
  0x90   :  { %711 = vrsqrt.f32 %v37_v14 }
  0x91   :  { %v36_v15 = vpop.xlane.xlu0 %35 }
  0x92   :  { %v38_v16 = vmax.f32 %v36_v15, 1e-24 }
  0x94   :  { %713 = vrsqrt.f32 %v38_v16  ;;  %v720_v16 = vmov 1.0|1.0  }
  0x9d   :  { %v712_v17 = vpop.eup %711 }
  0x9e   :  { %v810_v19 = vmul.f32 %v712_v17, %v27_v0  ;;  %v710_v0 = vld [vmem:[%s932_s2] sm:$0xff]   ;;  %s719_s2 = smov 127   ;;  %v448_v17 = vsel %vm429_vm5, %v29_v4, 0.0 }
  0xa1   :  { %v714_v18 = vpop.eup %713 }
  0xa2   :  { %v812_v20 = vmul.f32 %v714_v18, %v28_v1  ;;  %v717_v1 = vmov 0   ;;  %v449_v18 = vsel %vm429_vm5, %v30_v3, 0.0 }
  0xa3   :  { %684 = vset.pattern.permute.xlu1 %v717_v1  ;;  %683 = vset.pattern.permute.xlu0 %v717_v1 }
  0xa4   :  { %v43_v21 = vpack.c.bf16 %v812_v20, %v810_v19 }
  0xa6   :  { %626 = vmatmul.mubr.bf16.vlgmr.msra.gmra.mxu0 %v43_v21  ;;  %v450_v21 = vadd.f32 %v449_v18, %v448_v17 }
  0xa7   :  { %665 = vmatprep.mubr.msk.bf16.mxu0 %vm716_vm0, %v715_v2  ;;  %650 = vmatpush3.bf16.msra.mxu0 %v696_v42 }
  0xa8   :  { %651 = vmatprep.subr.bf16.mxu0 %v715_v2 }
  0xab   :  { %652 = vmatpush3.bf16.msra.mxu0 %v698_v44 }
  0xac   :  { %653 = vmatprep.subr.bf16.mxu0 %v715_v2 }
  0xaf   :  { %654 = vmatpush3.bf16.msra.mxu0 %v700_v46 }
  0xb0   :  { %655 = vmatprep.subr.bf16.mxu0 %v715_v2 }
  0xb3   :  { %656 = vmatpush3.bf16.msra.mxu0 %v702_v48 }
  0xb4   :  { %657 = vmatprep.subr.bf16.mxu0 %v715_v2 }
  0xb7   :  { %658 = vmatpush3.bf16.msra.mxu0 %v704_v50 }
  0xb8   :  { %659 = vmatprep.subr.bf16.mxu0 %v715_v2 }
  0xbb   :  { %660 = vmatpush3.bf16.msra.mxu0 %v706_v52 }
  0xbc   :  { %661 = vmatprep.subr.bf16.mxu0 %v715_v2 }
  0xbf   :  { %662 = vmatpush3.bf16.msra.mxu0 %v708_v62 }
  0xc0   :  { %663 = vmatprep.subr.bf16.mxu0 %v715_v2 }
  0xc3   :  { %664 = vmatpush3.bf16.msra.mxu0 %v710_v0 }
 0x166   :  { %v142_v22 = vpop.f32.mrf.mxu0 }
 0x167   :  { %v150_v24 = vmul.f32 2.0, %v142_v22 }
 0x168   :  { %v627_v25 = vpop.f32.mrf.mxu0 }
 0x169   :  { %v158_v26 = vsub.f32 %v555_v23, %v150_v24 }
 0x16a   :  { %v145_v27 = vpop.f32.mrf.mxu0 }
 0x16b   :  { %v151_v28 = vmul.f32 2.0, %v145_v27  ;;  %160 = vmin.xlane.f32.xlu1 %v158_v26 }
 0x16c   :  { %v628_v29 = vpop.f32.mrf.mxu0 }
 0x16d   :  { %v159_v30 = vsub.f32 %v555_v23, %v151_v28 }
 0x16f   :  { %162 = vmin.xlane.f32.xlu1 %v159_v30 }
 0x1f4   :  { %v161_v33 = vpop.xlane.xlu1 %160 }
 0x1f5   :  { %vm166_vm1 = vcmp.eq.f32.partialorder %v158_v26, %v161_v33 }
 0x1f6   :  { %v168_v34 = vsel %vm166_vm1, %v821_v32, 128 }
 0x1f7   :  { %v171_v35 = vshra.s32 %v168_v34, 16  ;;  %v170_v53 = vand.u32 65535, %v168_v34 }
 0x1f8   :  { %v163_v36 = vpop.xlane.xlu1 %162 }
 0x1f9   :  { %vm167_vm2 = vcmp.eq.f32.partialorder %v159_v30, %v163_v36  ;;  %v173_v37 = vcvt.s32.f32 %v171_v35  ;;  %v172_v56 = vcvt.s32.f32 %v170_v53 }
 0x1fa   :  { %v169_v38 = vsel %vm167_vm2, %v821_v32, 128 }
 0x1fb   :  { %174 = vmin.xlane.f32.xlu0 %v173_v37  ;;  %v185_v39 = vshra.s32 %v169_v38, 16  ;;  %v184_v54 = vand.u32 65535, %v169_v38 }
 0x1fd   :  { %v187_v40 = vcvt.s32.f32 %v185_v39  ;;  %v186_v59 = vcvt.s32.f32 %v184_v54 }
 0x1ff   :  { %188 = vmin.xlane.f32.xlu1 %v187_v40 }
 0x284   :  { %v175_v55 = vpop.xlane.xlu0 %174 }
 0x285   :  { %vm176_vm3 = vcmp.eq.f32.partialorder %v173_v37, %v175_v55  ;;  %v181_v6 = vcvt.f32.s32 %v175_v55 }
 0x286   :  { %v177_v57 = vsel %vm176_vm3, %v172_v56, inf }
 0x287   :  { %178 = vmin.xlane.f32.xlu0 %v177_v57  ;;  %v182_v8 = vshll.u32 %v181_v6, 16 }
 0x288   :  { %v189_v58 = vpop.xlane.xlu1 %188 }
 0x289   :  { %vm190_vm4 = vcmp.eq.f32.partialorder %v187_v40, %v189_v58  ;;  %v195_v9 = vcvt.f32.s32 %v189_v58 }
 0x28a   :  { %v191_v60 = vsel %vm190_vm4, %v186_v59, inf }
 0x28b   :  { %192 = vmin.xlane.f32.xlu1 %v191_v60  ;;  %v196_v13 = vshll.u32 %v195_v9, 16 }
 0x29c   :  { %422 = vperm.xlu1 %684, %v30_v3  }
 0x29d   :  { %417 = vperm.xlu0 %683, %v29_v4  }
 0x2a0   :  { %685 = vset.pattern.permute.xlu1 %v718_v5 }
 0x2a1   :  { %686 = vset.pattern.permute.xlu0 %v718_v5  ;;  %477 = vperm.xlu1 %685, %v30_v3  }
 0x2a5   :  { %473 = vperm.xlu1 %685, %v29_v4  }
 0x2a9   :  { %493 = vrot.lane.b32.xlu1 %v29_v4, %s719_s2 }
 0x2ad   :  { %495 = vrot.lane.b32.xlu1 %v30_v3, %s719_s2 }
 0x2bc   :  { %451 = vadd.xlane.f32.xlu0 %v450_v21 }
 0x310   :  { %v179_v7 = vpop.xlane.xlu0 %178 }
 0x311   :  { %v180_v10 = vcvt.f32.s32 %v179_v7 }
 0x313   :  { %v183_v11 = vadd.s32 %v182_v8, %v180_v10 }
 0x314   :  { %v193_v12 = vpop.xlane.xlu1 %192 }
 0x315   :  { %430 = vst.msk [vmem:[%s934_s7] sm:$0xff] %vm429_vm5, %v183_v11  ;;  %v194_v14 = vcvt.f32.s32 %v193_v12  ;;  %vm198_vm6 = vcmp.eq.s32.totalorder %v821_v32, %v183_v11 }
 0x317   :  { %v197_v15 = vadd.s32 %v196_v13, %v194_v14 }
 0x318   :  { %v423_v22 = vpop.permute.xlu1 %422  ;;  %v418_v23 = vpop.permute.xlu0 %417 }
 0x319   :  { %431 = vst.msk [vmem:[%s934_s7 + $0x8] sm:$0xff] %vm429_vm5, %v197_v15  ;;  %vm199_vm7 = vcmp.eq.s32.totalorder %v821_v32, %v197_v15 }
 0x31a   :  { %vm566_vm8 = vmpackc.low %vm199_vm7, %vm198_vm6 }
 0x31b   :  { %646 = vmatmul.mubr.msk.bf16.vlgmr.msra.gmra.mxu1 %vm566_vm8, %v720_v16  ;;  %666 = vmatmul.mubr.msk.bf16.vlgmr.msra.gmra.mxu0 %vm566_vm8, %v720_v16 }
 0x31c   :  { %v478_v24 = vpop.permute.xlu1 %477 }
 0x320   :  { %v474_v36 = vpop.permute.xlu1 %473 }
 0x324   :  { %v494_v46 = vpop.permute.xlu1 %493 }
 0x328   :  { %v496_v55 = vpop.permute.xlu1 %495 }
 0x329   :  { %v500_v58 = vsel %vm429_vm5, %v496_v55, 0.0 }
 0x345   :  { %v452_v60 = vpop.xlane.xlu0 %451 }
 0x346   :  { %v453_v61 = vrot.slane %v452_v60, 4 }
 0x348   :  { %v454_v62 = vadd.f32 %v453_v61, %v452_v60 }
 0x34a   :  { %v455_v63 = vrot.slane %v454_v62, 2 }
 0x34c   :  { %v456_v4 = vadd.f32 %v455_v63, %v454_v62 }
 0x34e   :  { %v457_v11 = vrot.slane %v456_v4, 1 }
 0x350   :  { %v458_v18 = vadd.f32 %v457_v11, %v456_v4 }
 0x3db   :  { %v319_v25 = vpop.f32.mrf.mxu1  ;;  %v408_v26 = vpop.f32.mrf.mxu0 }
 0x3dc   :  { %v409_v27 = vadd.f32 %v408_v26, %v319_v25 }
 0x3dd   :  { %v647_v28 = vpop.f32.mrf.mxu1  ;;  %v667_v29 = vpop.f32.mrf.mxu0 }
 0x3de   :  { %v425_v30 = vmul.f32 %v418_v23, %v409_v27  ;;  %v578_v27 = vsel %vm511_vm10, 1.0, %v715_v2  ;;  %v579_v29 = vsel %vm516_vm11, 1.0, %v715_v2 }
 0x3df   :  { %v322_v31 = vpop.f32.mrf.mxu1  ;;  %v411_v33 = vpop.f32.mrf.mxu0 }
 0x3e0   :  { %427 = vst [vmem:[%s935_s6] sm:$0xff] %v425_v30  ;;  %v432_v34 = vsub.f32 %v810_v19, %v425_v30  ;;  %v412_v35 = vadd.f32 %v411_v33, %v322_v31  ;;  %v463_v42 = vrot.slane %v425_v30, 1  ;;  %v580_v31 = vsel %vm522_vm12, 1.0, %v715_v2 }
 0x3e1   :  { %v648_v37 = vpop.f32.mrf.mxu1  ;;  %v668_v38 = vpop.f32.mrf.mxu0 }
 0x3e2   :  { %v426_v39 = vmul.f32 %v423_v22, %v412_v35  ;;  %v434_v40 = vmul.f32 %v432_v34, %v432_v34  ;;  %v581_v37 = vsel %vm528_vm13, 1.0, %v715_v2 }
 0x3e4   :  { %428 = vst [vmem:[%s935_s6 + $0x8] sm:$0xff] %v426_v39  ;;  %v464_v41 = vrot.slane %v426_v39, 1  ;;  %v433_v43 = vsub.f32 %v812_v20, %v426_v39  ;;  %v436_v48 = vmul.f32 %v434_v40, %v418_v23  ;;  %v499_v20 = vsel %vm429_vm5, %v494_v46, 0.0 }
 0x3e5   :  { %v501_v59 = vadd.f32 %v500_v58, %v499_v20 }
 0x3e6   :  { %v469_v44 = vsub.f32 %v426_v39, %v464_v41  ;;  %v465_v45 = vsel %vm462_vm9, %v463_v42, %v464_v41  ;;  %v435_v19 = vmul.f32 %v433_v43, %v433_v43 }
 0x3e7   :  { %v468_v47 = vsub.f32 %v425_v30, %v465_v45 }
 0x3e8   :  { %v471_v49 = vmul.f32 %v469_v44, %v469_v44  ;;  %v437_v50 = vmul.f32 %v435_v19, %v423_v22 }
 0x3e9   :  { %v470_v51 = vmul.f32 %v468_v47, %v468_v47 }
 0x3ea   :  { %v481_v52 = vmul.f32 %v478_v24, %v471_v49  ;;  %v438_v53 = vadd.f32 %v437_v50, %v436_v48 }
 0x3eb   :  { %v480_v54 = vmul.f32 %v474_v36, %v470_v51 }
 0x3ec   :  { %439 = vadd.xlane.f32.xlu1 %v438_v53  ;;  %v482_v56 = vsel %vm462_vm9, %v481_v52, 0.0 }
 0x3ed   :  { %v483_v57 = vadd.f32 %v482_v56, %v480_v54 }
 0x3f0   :  { %484 = vadd.xlane.f32.xlu1 %v483_v57 }
 0x3f4   :  { %502 = vadd.xlane.f32.xlu1 %v501_v59 }
 0x475   :  { %v440_v0 = vpop.xlane.xlu1 %439 }
 0x476   :  { %v441_v1 = vrot.slane %v440_v0, 4 }
 0x478   :  { %v442_v3 = vadd.f32 %v441_v1, %v440_v0 }
 0x479   :  { %v485_v5 = vpop.xlane.xlu1 %484 }
 0x47a   :  { %v443_v6 = vrot.slane %v442_v3, 2  ;;  %v486_v7 = vrot.slane %v485_v5, 4 }
 0x47c   :  { %v487_v8 = vadd.f32 %v486_v7, %v485_v5  ;;  %v444_v9 = vadd.f32 %v443_v6, %v442_v3 }
 0x47d   :  { %v503_v10 = vpop.xlane.xlu1 %502 }
 0x47e   :  { %v488_v12 = vrot.slane %v487_v8, 2  ;;  %v504_v13 = vrot.slane %v503_v10, 4  ;;  %v445_v14 = vrot.slane %v444_v9, 1 }
 0x480   :  { %v505_v15 = vadd.f32 %v504_v13, %v503_v10  ;;  %v446_v16 = vadd.f32 %v445_v14, %v444_v9  ;;  %v489_v17 = vadd.f32 %v488_v12, %v487_v8 }
 0x482   :  { %v506_v21 = vrot.slane %v505_v15, 2  ;;  %669 = vpush %v446_v16  ;;  %v490_v22 = vrot.slane %v489_v17, 1 }
 0x483   :  { %671 = vpush %v458_v18 }
 0x484   :  { %v507_v23 = vadd.f32 %v506_v21, %v505_v15  ;;  %v491_v24 = vadd.f32 %v490_v22, %v489_v17 }
 0x486   :  { %673 = vpush %v491_v24  ;;  %v508_v25 = vrot.slane %v507_v23, 1 }
 0x488   :  { %v509_v26 = vadd.f32 %v508_v25, %v507_v23 }
 0x48a   :  { %675 = vpush %v509_v26 }
 0x4b3   :  { %s670_s6 = spop %669 }
 0x4b4   :  { %v514_v28 = vstv %s670_s6  ;;  %s672_s17 = spop %671 }
 0x4b5   :  { %v519_v30 = vstv %s672_s17  ;;  %v515_v33 = vmul.f32 %v578_v27, %v514_v28 }
 0x4b6   :  { %v520_v34 = vmul.f32 %v579_v29, %v519_v30 }
 0x4b7   :  { %s674_s18 = spop %673 }
 0x4b8   :  { %v525_v35 = vstv %s674_s18  ;;  %v521_v38 = vadd.f32 %v520_v34, %v515_v33 }
 0x4b9   :  { %v526_v36 = vmul.f32 %v580_v31, %v525_v35 }
 0x4bb   :  { %s676_s19 = spop %675  ;;  %v527_v40 = vadd.f32 %v526_v36, %v521_v38 }
 0x4bc   :  { %v531_v39 = vstv %s676_s19 }
 0x4bd   :  { %v532_v41 = vmul.f32 %v581_v37, %v531_v39 }
 0x4bf   :  { %v533_v42 = vadd.f32 %v532_v41, %v527_v40 }
 0x4c1   :  { %534 = vst [vmem:[%s936_s8] sm:$0xff] %v533_v42 }

</bundles_post_ra>
